<compile_context>
chip_gen: v7x
topology: tpu7x:2x2x1
jax: 0.10.0
libtpu: 0.0.40
codegen_flags: <defaults>
</compile_context>

<pallas_src>
import functools

import jax
import jax.numpy as jnp
from jax import lax
from jax.experimental import pallas as pl
from jax.experimental.pallas import tpu as pltpu


def _ada_loss_kernel(x_ref, t_ref, y_ref, err_ref, *, inv_x_dim):
    # Cast per-tile in VMEM (keeps HBM traffic at the native input dtype).
    x = x_ref[...].astype(jnp.float32)            # [tile_n, x_dim]
    t = t_ref[...].astype(jnp.float32)            # [tile_n, x_dim]
    diff = t - x
    d2 = diff * diff                              # [tile_n, x_dim]

    # Row-sum over x_dim on the MXU: contract the last dim of both operands
    # (same pattern as q @ k^T).  Result is lane-dense: [1, tile_n].
    ones = jnp.ones((1, d2.shape[-1]), dtype=jnp.float32)
    b = lax.dot_general(
        ones, d2,
        dimension_numbers=(((1,), (1,)), ((), ())),
        preferred_element_type=jnp.float32,
    ) * inv_x_dim                                 # per-row mean squared error

    y = y_ref[...].astype(jnp.float32)            # [1, tile_n]
    # (1 - y) * b + y * max(0, 5 - b)  ==  b + y * (max(0, 5 - b) - b)
    err_ref[...] = b + y * (jnp.maximum(0.0, 5.0 - b) - b)


def ada_weighted_loss(input, target, input_label, global_step=0, strategy="linear"):
    """JAX/Pallas equivalent of AdaWeightedLoss.forward."""
    del global_step, strategy  # unused by the reference forward pass
    bsz, seq, x_dim = target.shape
    n_total = bsz * seq

    # Free reshapes only (no astype / transpose in HBM).
    x2 = input.reshape(n_total, x_dim)
    t2 = target.reshape(n_total, x_dim)
    y2 = input_label.reshape(1, n_total)

    # --- tile sizing --------------------------------------------------------
    # Big enough to amortize per-grid-step overhead, small enough that
    # 2 inputs x 2 pipeline buffers fit comfortably in scoped VMEM on every
    # generation (v5e 16 MiB default .. v7x 64 MiB physical).
    itemsize = jnp.dtype(target.dtype).itemsize
    row_bytes = max(x_dim * itemsize, 1)
    target_tile_bytes = 2 * 1024 * 1024               # ~2 MiB per input buffer
    tile_n = (target_tile_bytes // row_bytes) // 128 * 128
    tile_n = int(max(128, min(tile_n, 4096)))
    tile_n = min(tile_n, (n_total + 127) // 128 * 128)  # don't exceed padded N
    # TODO(synk): for very large x_dim (>~8K f32 elements) add a second grid
    # axis over x_dim with a VMEM row-accumulator instead of whole-row blocks.

    # Pad rows only when the whole problem is smaller than one tile (cheap).
    n_rows = n_total
    if n_rows < tile_n:
        pad = tile_n - n_rows
        x2 = jnp.pad(x2, ((0, pad), (0, 0)))
        t2 = jnp.pad(t2, ((0, pad), (0, 0)))
        y2 = jnp.pad(y2, ((0, 0), (0, pad)))
        n_rows = tile_n

    grid_n = pl.cdiv(n_rows, tile_n)
    n_out = grid_n * tile_n                            # padded output width

    kernel = functools.partial(_ada_loss_kernel, inv_x_dim=1.0 / x_dim)

    err = pl.pallas_call(
        kernel,
        out_shape=jax.ShapeDtypeStruct((1, n_out), jnp.float32),
        grid_spec=pltpu.PrefetchScalarGridSpec(
            num_scalar_prefetch=0,
            grid=(grid_n,),
            in_specs=[
                pl.BlockSpec((tile_n, x_dim), lambda i: (i, 0)),   # input rows
                pl.BlockSpec((tile_n, x_dim), lambda i: (i, 0)),   # target rows
                pl.BlockSpec((1, tile_n), lambda i: (0, i)),       # labels
            ],
            out_specs=pl.BlockSpec((1, tile_n), lambda i: (0, i)),  # per-row err
        ),
        compiler_params=pltpu.CompilerParams(
            # Steps are fully independent -> shard across both TCs on v7x.
            dimension_semantics=("parallel",),
            vmem_limit_bytes=32 * 1024 * 1024,
        ),
    )(x2, t2, y2)

    # Columns >= n_total are padding / boundary-block garbage; drop them, then
    # do the final tree reduction + normalization in plain JAX.
    return jnp.sum(err[0, :n_total]) / n_total


if __name__ == "__main__":
    key = jax.random.PRNGKey(0)
    bsz, seq, x_dim = 2, 8, 32
    k1, k2, k3 = jax.random.split(key, 3)

    inp = jax.random.normal(k1, (bsz, seq, x_dim), dtype=jnp.float32)
    tgt = jax.random.normal(k2, (bsz, seq, x_dim), dtype=jnp.float32)
    lbl = (jax.random.uniform(k3, (bsz, seq)) > 0.5).astype(jnp.float32)

    loss = ada_weighted_loss(inp, tgt, lbl, global_step=0)
    loss = jax.block_until_ready(loss)

    # Pure-JAX reference (mirrors the PyTorch forward exactly).
    b_ref = jnp.sum((tgt - inp) ** 2, axis=-1) / x_dim
    err_ref = (1.0 - lbl) * b_ref + lbl * jnp.maximum(0.0, 5.0 - b_ref)
    ref = jnp.sum(err_ref) / (bsz * seq)

    assert jnp.allclose(loss, ref, rtol=1e-5, atol=1e-5), (loss, ref)
    print("KERNEL_OK")
</pallas_src>

<mosaic_0001>
module attributes {stable_mosaic.version = 11 : i64} {
  func.func @_ada_loss_kernel(%arg0: i32, %arg1: memref<128x32xf32, #tpu.memory_space<vmem>>, %arg2: memref<128x32xf32, #tpu.memory_space<vmem>>, %arg3: memref<1x128xf32, #tpu.memory_space<vmem>>, %arg4: memref<1x128xf32, #tpu.memory_space<vmem>>) attributes {dimension_semantics = [#tpu.dimension_semantics<parallel>], iteration_bounds = array<i64: 1>, scalar_prefetch = 0 : i64, scratch_operands = 0 : i64, tpu.core_type = #tpu.core_type<tc>, window_params = [{transform_indices = @transform_0, window_bounds = array<i64: 128, 32>}, {transform_indices = @transform_1, window_bounds = array<i64: 128, 32>}, {transform_indices = @transform_2, window_bounds = array<i64: 1, 128>}, {transform_indices = @transform_3, window_bounds = array<i64: 1, 128>}]} {
    %c0 = arith.constant 0 : index
    %c0_0 = arith.constant 0 : index
    %0 = vector.load %arg1[%c0, %c0_0] : memref<128x32xf32, #tpu.memory_space<vmem>>, vector<128x32xf32>
    %c0_1 = arith.constant 0 : index
    %c0_2 = arith.constant 0 : index
    %1 = vector.load %arg2[%c0_1, %c0_2] : memref<128x32xf32, #tpu.memory_space<vmem>>, vector<128x32xf32>
    %2 = arith.subf %1, %0 : vector<128x32xf32>
    %3 = arith.mulf %2, %2 : vector<128x32xf32>
    %cst = arith.constant 1.000000e+00 : f32
    %4 = vector.broadcast %cst : f32 to vector<1x32xf32>
    %cst_3 = arith.constant dense<0.000000e+00> : vector<1x128xf32>
    %5 = tpu.matmul %4, %3, %cst_3 {dimension_numbers = #tpu.dot_dimension_numbers<[1], [1], [0], [0], [0, 0, 1, 0], [], []>} : vector<1x32xf32>, vector<128x32xf32>, vector<1x128xf32> -> vector<1x128xf32>
    %cst_4 = arith.constant 3.125000e-02 : f32
    %6 = vector.broadcast %cst_4 : f32 to vector<1x128xf32>
    %7 = arith.mulf %5, %6 : vector<1x128xf32>
    %c0_5 = arith.constant 0 : index
    %c0_6 = arith.constant 0 : index
    %8 = vector.load %arg3[%c0_5, %c0_6] : memref<1x128xf32, #tpu.memory_space<vmem>>, vector<1x128xf32>
    %cst_7 = arith.constant 5.000000e+00 : f32
    %9 = vector.broadcast %cst_7 : f32 to vector<1x128xf32>
    %10 = arith.subf %9, %7 : vector<1x128xf32>
    %cst_8 = arith.constant 0.000000e+00 : f32
    %11 = vector.broadcast %cst_8 : f32 to vector<1x128xf32>
    %12 = arith.maximumf %11, %10 : vector<1x128xf32>
    %13 = arith.subf %12, %7 : vector<1x128xf32>
    %14 = arith.mulf %8, %13 : vector<1x128xf32>
    %15 = arith.addf %7, %14 : vector<1x128xf32>
    %c0_9 = arith.constant 0 : index
    %c0_10 = arith.constant 0 : index
    %16 = vector.load %arg4[%c0_9, %c0_10] : memref<1x128xf32, #tpu.memory_space<vmem>>, vector<1x128xf32>
    tpu.vector_store %arg4[%c0_9, %c0_10], %15 {strides = array<i32>} : memref<1x128xf32, #tpu.memory_space<vmem>>, vector<1x128xf32>,
    return
  }
  func.func @transform_0(%arg0: i32) -> (i32, i32) {
    %c0_i32 = arith.constant 0 : i32
    %c0_i32_0 = arith.constant 0 : i32
    return %arg0, %c0_i32 : i32, i32
  }
  func.func @transform_1(%arg0: i32) -> (i32, i32) {
    %c0_i32 = arith.constant 0 : i32
    %c0_i32_0 = arith.constant 0 : i32
    return %arg0, %c0_i32 : i32, i32
  }
  func.func @transform_2(%arg0: i32) -> (i32, i32) {
    %c0_i32 = arith.constant 0 : i32
    %c0_i32_0 = arith.constant 0 : i32
    return %c0_i32, %arg0 : i32, i32
  }
  func.func @transform_3(%arg0: i32) -> (i32, i32) {
    %c0_i32 = arith.constant 0 : i32
    %c0_i32_0 = arith.constant 0 : i32
    return %c0_i32, %arg0 : i32, i32
  }
}

</mosaic_0001>

<bundles_post_ra>
// kernel: tpu_custom_call.1
= control target key start
LH: loop header
LB: loop body
LE: loop exit
PB: predicated region body
PF: predicated region fallthrough
CT: control target
= control target key end

     0   :  { %v353_v3 = vmov 0.0|0.0   ;;  %vm79_vm0 = vcmask 261120   ;;  %vm354_vm1 = vmmov 0   ;;  %v355_v11 = vmov 0.0   ;;  %s520_s0 = inlined_call_operand.vmem [shape: f32[128,32], index: 0, kind: input, shape index: {}]   ;;  %s521_s1 = inlined_call_operand.vmem [shape: f32[128,32], index: 1, kind: input, shape index: {}]   ;;  %s522_s2 = inlined_call_operand.vmem [shape: f32[1,128], index: 2, kind: input, shape index: {}]   ;;  %s523_s3 = inlined_call_operand.hbm [shape: f32[1,128], index: 3, kind: output, shape index: {}]  }
   0x1   :  { %v15_v0 = vld [vmem:[%s520_s0] sm:$0xff]  ;;  %v16_v1 = vld [vmem:[%s520_s0 + $0x8] sm:$0xff]  ;;  %292 = vmatprep.subr.bf16.mxu0 %v353_v3  ;;  %v17_v6 = vld [vmem:[%s520_s0 + $0x10] sm:$0xff]  ;;  %289 = vmatprep.mubr.msk.f32.mxu0 %vm354_vm1, %v355_v11 }
   0x2   :  { %v31_v2 = vld [vmem:[%s521_s1] sm:$0xff]  ;;  %v32_v4 = vld [vmem:[%s521_s1 + $0x8] sm:$0xff]  ;;  %v18_v8 = vld [vmem:[%s520_s0 + $0x18] sm:$0xff] }
   0x3   :  { %v47_v5 = vsub.f32 %v31_v2, %v15_v0  ;;  %v48_v7 = vsub.f32 %v32_v4, %v16_v1  ;;  %v33_v9 = vld [vmem:[%s521_s1 + $0x10] sm:$0xff]  ;;  %v34_v10 = vld [vmem:[%s521_s1 + $0x18] sm:$0xff]  ;;  %vm405_vm2 = vmpackc.low %vm79_vm0, %vm79_vm0 }
   0x4   :  { %v49_v14 = vsub.f32 %v33_v9, %v17_v6  ;;  %v50_v15 = vsub.f32 %v34_v10, %v18_v8  ;;  %v19_v20 = vld [vmem:[%s520_s0 + $0x20] sm:$0xff]  ;;  %v20_v21 = vld [vmem:[%s520_s0 + $0x28] sm:$0xff] }
   0x5   :  { %v63_v12 = vmul.f32 %v47_v5, %v47_v5  ;;  %v64_v13 = vmul.f32 %v48_v7, %v48_v7  ;;  %v35_v22 = vld [vmem:[%s521_s1 + $0x20] sm:$0xff]  ;;  %v36_v23 = vld [vmem:[%s521_s1 + $0x28] sm:$0xff] }
   0x6   :  { %v65_v18 = vmul.f32 %v49_v14, %v49_v14  ;;  %v66_v19 = vmul.f32 %v50_v15, %v50_v15 }
   0x7   :  { %v293_v17 = vpack.c.bf16 %v64_v13, %v63_v12 }
   0x9   :  { %295 = vmatpush3.bf16.xpose.msk.msra.mxu0 %vm405_vm2, %v293_v17 }
   0xa   :  { %296 = vmatprep.subr.bf16.mxu0 %v353_v3 }
   0xb   :  { %8 = vsyncpa [#allocation3], 0  ;;  %v297_v24 = vpack.c.bf16 %v66_v19, %v65_v18  ;;  %v51_v25 = vsub.f32 %v35_v22, %v19_v20  ;;  %v52_v26 = vsub.f32 %v36_v23, %v20_v21  ;;  %v21_v29 = vld [vmem:[%s520_s0 + $0x30] sm:$0xff]  ;;  %v22_v30 = vld [vmem:[%s520_s0 + $0x38] sm:$0xff]  ;;  %v356_v12 = vmov 1.0   ;;  %s357_s22 = smov [#allocation2]  }
   0xc   :  { %v37_v31 = vld [vmem:[%s521_s1 + $0x30] sm:$0xff]  ;;  %v38_v32 = vld [vmem:[%s521_s1 + $0x38] sm:$0xff]  ;;  %v23_v38 = vld [vmem:[%s520_s0 + $0x40] sm:$0xff]  ;;  %s215_s23 = sshll.u32 %s357_s22, 4  ;;  %s216_s23 = int_to_ptr.vmem [resolvable:$true] %s215_s23 }
   0xd   :  { %v67_v27 = vmul.f32 %v51_v25, %v51_v25  ;;  %v68_v28 = vmul.f32 %v52_v26, %v52_v26  ;;  %v53_v34 = vsub.f32 %v37_v31, %v21_v29  ;;  %v54_v35 = vsub.f32 %v38_v32, %v22_v30  ;;  %v24_v39 = vld [vmem:[%s520_s0 + $0x48] sm:$0xff]  ;;  %v39_v40 = vld [vmem:[%s521_s1 + $0x40] sm:$0xff]  ;;  %v25_v47 = vld [vmem:[%s520_s0 + $0x50] sm:$0xff]  ;;  %s329_s24 = scalar_lea.vmem %s216_s23, 16  ;;  %s333_s25 = scalar_lea.vmem %s216_s23, 32 }
   0xe   :  { %v40_v41 = vld [vmem:[%s521_s1 + $0x48] sm:$0xff]  ;;  %v55_v43 = vsub.f32 %v39_v40, %v23_v38  ;;  %v26_v48 = vld [vmem:[%s520_s0 + $0x58] sm:$0xff]  ;;  %v41_v49 = vld [vmem:[%s521_s1 + $0x50] sm:$0xff]  ;;  %p330_p0 = scmp.ne.s32.totalorder %s216_s23, %s329_s24  ;;  %p334_p1 = scmp.lt.s32.totalorder %s216_s23, %s216_s23 }
   0xf   :  { %v301_v33 = vpack.c.bf16 %v68_v28, %v67_v27  ;;  %v69_v36 = vmul.f32 %v53_v34, %v53_v34  ;;  %v70_v37 = vmul.f32 %v54_v35, %v54_v35  ;;  %v56_v44 = vsub.f32 %v40_v41, %v24_v39  ;;  %v42_v50 = vld [vmem:[%s521_s1 + $0x58] sm:$0xff]  ;;  %v27_v56 = vld [vmem:[%s520_s0 + $0x60] sm:$0xff]  ;;  %v28_v57 = vld [vmem:[%s520_s0 + $0x68] sm:$0xff]  ;;  %p335_p2 = scmp.lt.s32.totalorder %s333_s25, %s329_s24 }
  0x10   :  { %v71_v45 = vmul.f32 %v55_v43, %v55_v43  ;;  %v57_v52 = vsub.f32 %v41_v49, %v25_v47  ;;  %v58_v53 = vsub.f32 %v42_v50, %v26_v48  ;;  %v43_v58 = vld [vmem:[%s521_s1 + $0x60] sm:$0xff]  ;;  %v44_v59 = vld [vmem:[%s521_s1 + $0x68] sm:$0xff]  ;;  %v29_v1 = vld [vmem:[%s520_s0 + $0x70] sm:$0xff] }
  0x11   :  { %299 = vmatpush3.bf16.xpose.msk.msra.mxu0 %vm405_vm2, %v297_v24  ;;  %v305_v42 = vpack.c.bf16 %v70_v37, %v69_v36  ;;  %v72_v46 = vmul.f32 %v56_v44, %v56_v44  ;;  %v59_v61 = vsub.f32 %v43_v58, %v27_v56  ;;  %v60_v62 = vsub.f32 %v44_v59, %v28_v57  ;;  %v30_v2 = vld [vmem:[%s520_s0 + $0x78] sm:$0xff]  ;;  %v45_v4 = vld [vmem:[%s521_s1 + $0x70] sm:$0xff]  ;;  %v202_v19 = vld [vmem:[%s522_s2] sm:$0x1]  ;;  %p336_p3 = por %p335_p2, %p334_p1 }
  0x12   :  { %300 = vmatprep.subr.bf16.mxu0 %v353_v3  ;;  %v73_v54 = vmul.f32 %v57_v52, %v57_v52  ;;  %v74_v55 = vmul.f32 %v58_v53, %v58_v53  ;;  %v46_v5 = vld [vmem:[%s521_s1 + $0x78] sm:$0xff]  ;;  %v61_v7 = vsub.f32 %v45_v4, %v29_v1 }
  0x13   :  { %v309_v51 = vpack.c.bf16 %v72_v46, %v71_v45  ;;  %v75_v63 = vmul.f32 %v59_v61, %v59_v61  ;;  %v76_v0 = vmul.f32 %v60_v62, %v60_v62  ;;  %v62_v8 = vsub.f32 %v46_v5, %v30_v2  ;;  %p337_p4 = pnand %p336_p3, %p330_p0 }
  0x14   :  { %v313_v60 = vpack.c.bf16 %v74_v55, %v73_v54  ;;  %v77_v9 = vmul.f32 %v61_v7, %v61_v7 }
  0x15   :  { %v317_v6 = vpack.c.bf16 %v76_v0, %v75_v63  ;;  %v78_v10 = vmul.f32 %v62_v8, %v62_v8 }
  0x17   :  { %v321_v11 = vpack.c.bf16 %v78_v10, %v77_v9 }
  0x19   :  { %303 = vmatpush3.bf16.xpose.msk.msra.mxu0 %vm405_vm2, %v301_v33 }
  0x1a   :  { %304 = vmatprep.subr.bf16.mxu0 %v353_v3 }
  0x21   :  { %307 = vmatpush3.bf16.xpose.msk.msra.mxu0 %vm405_vm2, %v305_v42 }
  0x22   :  { %308 = vmatprep.subr.bf16.mxu0 %v353_v3 }
  0x29   :  { %311 = vmatpush3.bf16.xpose.msk.msra.mxu0 %vm405_vm2, %v309_v51 }
  0x2a   :  { %312 = vmatprep.subr.bf16.mxu0 %v353_v3 }
  0x31   :  { %315 = vmatpush3.bf16.xpose.msk.msra.mxu0 %vm405_vm2, %v313_v60 }
  0x32   :  { %316 = vmatprep.subr.bf16.mxu0 %v353_v3 }
  0x39   :  { %319 = vmatpush3.bf16.xpose.msk.msra.mxu0 %vm405_vm2, %v317_v6 }
  0x3a   :  { %320 = vmatprep.subr.bf16.mxu0 %v353_v3 }
  0x41   :  { %323 = vmatpush3.bf16.xpose.msk.msra.mxu0 %vm405_vm2, %v321_v11 }
  0x48   :  { %290 = vmatmul.mubr.msk.f32.vlgmr.msra.gmra.mrb[0].mxu0 %vm79_vm0, %v356_v12 }
 0x11b   :  { %v197_v13 = vpop.f32.mrb[0].mxu0 }
 0x11c   :  { %v201_v14 = vmul.f32 0.03125, %v197_v13  ;;  %v291_v15 = vpop.f32.mrb[1].mxu0 }
 0x11e   :  { %v203_v17 = vsub.f32 5.0, %v201_v14 }
 0x120   :  { %v204_v18 = vmax.f32 %v203_v17, 0.0 }
 0x122   :  { %v205_v20 = vsub.f32 %v204_v18, %v201_v14 }
 0x124   :  { %v206_v3 = vmul.f32 %v205_v20, %v202_v19 }
 0x126   :  { %v207_v21 = vadd.f32 %v206_v3, %v201_v14 }
 0x128   :  { %208 = vst [vmem:[#allocation2] sm:$0x1] %v207_v21 }
 0x129   :  { %340 = shalt.err (!%p337_p4)
}
 0x12a   :  { %s341_s28 = scalar_lea.hbm %s523_s3, 16 }
 0x12b   :  { %p342_p5 = scmp.ne.s32.totalorder %s523_s3, %s341_s28  ;;  %p345_p6 = scmp.lt.u32.totalorder %s341_s28, %s523_s3 }
 0x12d   :  { %p347_p7 = pnand %p345_p6, %p342_p5 }
 0x12f   :  { %350 = shalt.err (!%p347_p7)
}
 0x130   :  { %218 = dma.vmem_to_hbm [thread:$0]  %s216_s23, 16, %s523_s3, [#allocation3]  }
 0x131   :  { %351 = dma.done.wait [#allocation3], 16  }
 0x132   :  { %352 = vsyncadd [#allocation3], 4294967280 }
 0x133   :  { %222 = vsyncpa [#allocation3], 1 }

</bundles_post_ra>
